<compile_context>
chip_gen: v5e
topology: v5e:2x2
jax: 0.10.0
libtpu: 0.0.40
codegen_flags: <defaults>
</compile_context>

<pallas_src>
import functools

import jax
import jax.numpy as jnp
from jax.experimental import pallas as pl
from jax.experimental.pallas import tpu as pltpu


def _contrastive_loss_kernel(x_ref, y_ref, label_ref, out_ref, acc_ref, *,
                             margin_pos, margin_neg, batch, tile_b):
    i = pl.program_id(0)

    @pl.when(i == 0)
    def _():
        acc_ref[...] = jnp.zeros_like(acc_ref)

    x = x_ref[...].astype(jnp.float32)            # (TB, D)
    y = y_ref[...].astype(jnp.float32)            # (TB, D)
    label = label_ref[...]                        # (TB, 1), float32

    diff = x - y
    sq_sum = jnp.sum(diff * diff, axis=1, keepdims=True)    # (TB, 1)
    dist = jnp.sqrt(sq_sum + 1e-12)                          # (TB, 1)

    pos = label * jnp.maximum(dist - margin_pos, 0.0)
    neg = (1.0 - label) * jnp.maximum(margin_neg - dist, 0.0)

    # Rows beyond the true batch (overhang of the last tile) hold undefined
    # data; select them out so inf/NaN garbage cannot poison the reduction.
    row_ids = jax.lax.broadcasted_iota(jnp.int32, (tile_b, 1), 0) + i * tile_b
    contrib = jnp.where(row_ids < batch, pos + neg, 0.0)

    acc_ref[...] += jnp.sum(contrib, axis=(0, 1), keepdims=True)

    @pl.when(i == pl.num_programs(0) - 1)
    def _():
        out_ref[...] = acc_ref[...] * jnp.float32(1.0 / batch)


def contrastive_loss(x, y, label, margin_pos, margin_neg, *, tile_b=None):
    """Pallas TPU implementation of ContrastiveLoss.forward.

    Args:
      x, y:   (B, D) arrays (any float dtype; math runs in f32).
      label:  (B,) array of 0/1 indicators (any float/int dtype).
      margin_pos, margin_neg: Python floats, margin_pos <= margin_neg.
      tile_b: optional batch-tile override (multiple of 8, or >= B).
    Returns:
      scalar float32 loss.
    """
    assert margin_pos <= margin_neg
    b, d = x.shape
    assert y.shape == (b, d)
    assert label.shape == (b,)

    if tile_b is None:
        itemsize = max(jnp.dtype(x.dtype).itemsize, jnp.dtype(y.dtype).itemsize)
        # VMEM budget per pipeline buffer set: x + y tiles plus the (TB, 1)
        # label tile (lane-padded to an (8,128) f32 tile -> ~512 B per 8 rows).
        row_bytes = 2 * d * itemsize + 512
        budget = 4 * 1024 * 1024          # ~8 MiB once double-buffered
        tb = max(8, (budget // row_bytes) // 8 * 8)
        tb = min(tb, 8192)
        if b <= tb:
            tb = b                        # single tile; block dims == full dims
    else:
        tb = int(tile_b)
        if tb >= b:
            tb = b
        else:
            assert tb % 8 == 0, "tile_b must be a multiple of 8 (or >= B)"

    num_tiles = pl.cdiv(b, tb)
    label2d = label.astype(jnp.float32).reshape(b, 1)

    kernel = functools.partial(
        _contrastive_loss_kernel,
        margin_pos=float(margin_pos),
        margin_neg=float(margin_neg),
        batch=b,
        tile_b=tb,
    )

    out = pl.pallas_call(
        kernel,
        out_shape=jax.ShapeDtypeStruct((1, 1), jnp.float32),
        grid=(num_tiles,),
        in_specs=[
            pl.BlockSpec((tb, d), lambda i: (i, 0)),      # x, streamed
            pl.BlockSpec((tb, d), lambda i: (i, 0)),      # y, streamed
            pl.BlockSpec((tb, 1), lambda i: (i, 0)),      # label, streamed
        ],
        out_specs=pl.BlockSpec((1, 1), lambda i: (0, 0)),  # resident scalar
        scratch_shapes=[pltpu.VMEM((1, 1), jnp.float32)],
        compiler_params=pltpu.CompilerParams(
            dimension_semantics=("arbitrary",),            # batch is a reduction
            vmem_limit_bytes=32 * 1024 * 1024,
        ),
    )(x, y, label2d)
    return out[0, 0]


def _reference_loss(x, y, label, margin_pos, margin_neg):
    # Pure-JAX reference mirroring the PyTorch code.
    xf = x.astype(jnp.float32)
    yf = y.astype(jnp.float32)
    lf = label.astype(jnp.float32)
    dist = jnp.sqrt(jnp.sum((xf - yf) ** 2, axis=1) + 1e-12)
    return (jnp.mean(lf * jnp.maximum(dist - margin_pos, 0.0))
            + jnp.mean((1.0 - lf) * jnp.maximum(margin_neg - dist, 0.0)))


if __name__ == "__main__":
    margin_pos, margin_neg = 0.5, 2.0

    # Case 1: small, aligned-ish shapes.
    kx, ky, kl = jax.random.split(jax.random.PRNGKey(0), 3)
    B, D = 8, 32
    x = jax.random.normal(kx, (B, D), dtype=jnp.float32)
    y = jax.random.normal(ky, (B, D), dtype=jnp.float32)
    label = jax.random.bernoulli(kl, 0.5, (B,)).astype(jnp.float32)

    loss = jax.block_until_ready(contrastive_loss(x, y, label, margin_pos, margin_neg))
    ref = _reference_loss(x, y, label, margin_pos, margin_neg)
    assert jnp.allclose(loss, ref, rtol=1e-5, atol=1e-5), (loss, ref)

    # Case 2: B and D not multiples of (8, 128) -> full-dim single-tile path.
    kx2, ky2, kl2 = jax.random.split(jax.random.PRNGKey(0), 3)
    B2, D2 = 6, 20
    x2 = jax.random.normal(kx2, (B2, D2), dtype=jnp.float32)
    y2 = jax.random.normal(ky2, (B2, D2), dtype=jnp.float32)
    label2 = jax.random.bernoulli(kl2, 0.5, (B2,)).astype(jnp.float32)

    loss2 = jax.block_until_ready(contrastive_loss(x2, y2, label2, margin_pos, margin_neg))
    ref2 = _reference_loss(x2, y2, label2, margin_pos, margin_neg)
    assert jnp.allclose(loss2, ref2, rtol=1e-5, atol=1e-5), (loss2, ref2)

    # Case 3: multi-tile grid with a partial (masked) last tile, bf16 inputs.
    kx3, ky3, kl3 = jax.random.split(jax.random.PRNGKey(0), 3)
    B3, D3 = 20, 16
    x3 = jax.random.normal(kx3, (B3, D3), dtype=jnp.bfloat16)
    y3 = jax.random.normal(ky3, (B3, D3), dtype=jnp.bfloat16)
    label3 = jax.random.bernoulli(kl3, 0.5, (B3,)).astype(jnp.float32)

    loss3 = jax.block_until_ready(
        contrastive_loss(x3, y3, label3, margin_pos, margin_neg, tile_b=8))
    ref3 = _reference_loss(x3, y3, label3, margin_pos, margin_neg)
    assert jnp.allclose(loss3, ref3, rtol=2e-2, atol=2e-2), (loss3, ref3)

    print("KERNEL_OK")
</pallas_src>

<mosaic_0001>
module attributes {stable_mosaic.version = 11 : i64} {
  func.func @_contrastive_loss_kernel(%arg0: i32, %arg1: memref<8x32xf32, #tpu.memory_space<vmem>>, %arg2: memref<8x32xf32, #tpu.memory_space<vmem>>, %arg3: memref<8x1xf32, #tpu.memory_space<vmem>>, %arg4: memref<1x1xf32, #tpu.memory_space<vmem>>, %arg5: memref<1x1xf32, #tpu.memory_space<vmem>>) attributes {dimension_semantics = [#tpu.dimension_semantics<arbitrary>], iteration_bounds = array<i64: 1>, scalar_prefetch = 0 : i64, scratch_operands = 1 : i64, tpu.core_type = #tpu.core_type<tc>, window_params = [{transform_indices = @transform_0, window_bounds = array<i64: 8, 32>}, {transform_indices = @transform_1, window_bounds = array<i64: 8, 32>}, {transform_indices = @transform_2, window_bounds = array<i64: 8, 1>}, {pipeline_mode = #tpu.pipeline_mode<synchronous>, transform_indices = @transform_3, window_bounds = array<i64: 1, 1>}]} {
    %c0_i32 = arith.constant 0 : i32
    %0 = arith.cmpi eq, %arg0, %c0_i32 : i32
    %1 = arith.extui %0 : i1 to i32
    %c0_i32_0 = arith.constant 0 : i32
    %2 = arith.cmpi ne, %1, %c0_i32_0 : i32
    scf.if %2 {
      %cst_21 = arith.constant 0.000000e+00 : f32
      %45 = vector.broadcast %cst_21 : f32 to vector<1x1xf32>
      %c0_22 = arith.constant 0 : index
      %c0_23 = arith.constant 0 : index
      %46 = vector.load %arg5[%c0_22, %c0_23] : memref<1x1xf32, #tpu.memory_space<vmem>>, vector<1x1xf32>
      tpu.vector_store %arg5[%c0_22, %c0_23], %45 {strides = array<i32>} : memref<1x1xf32, #tpu.memory_space<vmem>>, vector<1x1xf32>,
    } else {
    }
    %c0 = arith.constant 0 : index
    %c0_1 = arith.constant 0 : index
    %3 = vector.load %arg1[%c0, %c0_1] : memref<8x32xf32, #tpu.memory_space<vmem>>, vector<8x32xf32>
    %c0_2 = arith.constant 0 : index
    %c0_3 = arith.constant 0 : index
    %4 = vector.load %arg2[%c0_2, %c0_3] : memref<8x32xf32, #tpu.memory_space<vmem>>, vector<8x32xf32>
    %c0_4 = arith.constant 0 : index
    %c0_5 = arith.constant 0 : index
    %5 = vector.load %arg3[%c0_4, %c0_5] : memref<8x1xf32, #tpu.memory_space<vmem>>, vector<8x1xf32>
    %6 = arith.subf %3, %4 : vector<8x32xf32>
    %7 = arith.mulf %6, %6 : vector<8x32xf32>
    %cst = arith.constant dense<0.000000e+00> : vector<8xf32>
    %8 = vector.multi_reduction <add>, %7, %cst [1] : vector<8x32xf32> to vector<8xf32>
    %9 = vector.shape_cast %8 : vector<8xf32> to vector<8x1xf32>
    %cst_6 = arith.constant 9.99999996E-13 : f32
    %10 = vector.broadcast %cst_6 : f32 to vector<8x1xf32>
    %11 = arith.addf %9, %10 : vector<8x1xf32>
    %12 = math.sqrt %11 : vector<8x1xf32>
    %cst_7 = arith.constant 5.000000e-01 : f32
    %13 = vector.broadcast %cst_7 : f32 to vector<8x1xf32>
    %14 = arith.subf %12, %13 : vector<8x1xf32>
    %cst_8 = arith.constant 0.000000e+00 : f32
    %15 = vector.broadcast %cst_8 : f32 to vector<8x1xf32>
    %16 = arith.maximumf %14, %15 : vector<8x1xf32>
    %17 = arith.mulf %5, %16 : vector<8x1xf32>
    %cst_9 = arith.constant 1.000000e+00 : f32
    %18 = vector.broadcast %cst_9 : f32 to vector<8x1xf32>
    %19 = arith.subf %18, %5 : vector<8x1xf32>
    %cst_10 = arith.constant 2.000000e+00 : f32
    %20 = vector.broadcast %cst_10 : f32 to vector<8x1xf32>
    %21 = arith.subf %20, %12 : vector<8x1xf32>
    %cst_11 = arith.constant 0.000000e+00 : f32
    %22 = vector.broadcast %cst_11 : f32 to vector<8x1xf32>
    %23 = arith.maximumf %21, %22 : vector<8x1xf32>
    %24 = arith.mulf %19, %23 : vector<8x1xf32>
    %25 = tpu.iota {dimensions = array<i32: 0>} : vector<8x1xi32>
    %c8_i32 = arith.constant 8 : i32
    %26 = arith.muli %arg0, %c8_i32 : i32
    %27 = vector.broadcast %26 : i32 to vector<8x1xi32>
    %28 = arith.addi %25, %27 : vector<8x1xi32>
    %c8_i32_12 = arith.constant 8 : i32
    %29 = vector.broadcast %c8_i32_12 : i32 to vector<8x1xi32>
    %30 = arith.cmpi slt, %28, %29 : vector<8x1xi32>
    %31 = arith.addf %17, %24 : vector<8x1xf32>
    %cst_13 = arith.constant 0.000000e+00 : f32
    %32 = vector.broadcast %cst_13 : f32 to vector<8x1xf32>
    %33 = arith.select %30, %31, %32 : vector<8x1xi1>, vector<8x1xf32>
    %c0_14 = arith.constant 0 : index
    %c0_15 = arith.constant 0 : index
    %34 = vector.load %arg5[%c0_14, %c0_15] : memref<1x1xf32, #tpu.memory_space<vmem>>, vector<1x1xf32>
    %35 = vector.shape_cast %33 : vector<8x1xf32> to vector<1x8x1xf32>
    %cst_16 = arith.constant dense<0.000000e+00> : vector<1xf32>
    %36 = vector.multi_reduction <add>, %35, %cst_16 [1, 2] : vector<1x8x1xf32> to vector<1xf32>
    %37 = vector.shape_cast %36 : vector<1xf32> to vector<1x1x1xf32>
    %38 = vector.extract %37[0, 0, 0] : f32 from vector<1x1x1xf32>
    %39 = vector.broadcast %38 : f32 to vector<1x1xf32>
    %40 = arith.addf %34, %39 : vector<1x1xf32>
    %c0_17 = arith.constant 0 : index
    %c0_18 = arith.constant 0 : index
    %41 = vector.load %arg5[%c0_17, %c0_18] : memref<1x1xf32, #tpu.memory_space<vmem>>, vector<1x1xf32>
    tpu.vector_store %arg5[%c0_17, %c0_18], %40 {strides = array<i32>} : memref<1x1xf32, #tpu.memory_space<vmem>>, vector<1x1xf32>,
    %c0_i32_19 = arith.constant 0 : i32
    %42 = arith.cmpi eq, %arg0, %c0_i32_19 : i32
    %43 = arith.extui %42 : i1 to i32
    %c0_i32_20 = arith.constant 0 : i32
    %44 = arith.cmpi ne, %43, %c0_i32_20 : i32
    scf.if %44 {
      %c0_21 = arith.constant 0 : index
      %c0_22 = arith.constant 0 : index
      %45 = vector.load %arg5[%c0_21, %c0_22] : memref<1x1xf32, #tpu.memory_space<vmem>>, vector<1x1xf32>
      %cst_23 = arith.constant 1.250000e-01 : f32
      %46 = vector.broadcast %cst_23 : f32 to vector<1x1xf32>
      %47 = arith.mulf %45, %46 : vector<1x1xf32>
      %c0_24 = arith.constant 0 : index
      %c0_25 = arith.constant 0 : index
      %48 = vector.load %arg4[%c0_24, %c0_25] : memref<1x1xf32, #tpu.memory_space<vmem>>, vector<1x1xf32>
      tpu.vector_store %arg4[%c0_24, %c0_25], %47 {strides = array<i32>} : memref<1x1xf32, #tpu.memory_space<vmem>>, vector<1x1xf32>,
    } else {
    }
    return
  }
  func.func @transform_0(%arg0: i32) -> (i32, i32) {
    %c0_i32 = arith.constant 0 : i32
    %c0_i32_0 = arith.constant 0 : i32
    return %arg0, %c0_i32 : i32, i32
  }
  func.func @transform_1(%arg0: i32) -> (i32, i32) {
    %c0_i32 = arith.constant 0 : i32
    %c0_i32_0 = arith.constant 0 : i32
    return %arg0, %c0_i32 : i32, i32
  }
  func.func @transform_2(%arg0: i32) -> (i32, i32) {
    %c0_i32 = arith.constant 0 : i32
    %c0_i32_0 = arith.constant 0 : i32
    return %arg0, %c0_i32 : i32, i32
  }
  func.func @transform_3(%arg0: i32) -> (i32, i32) {
    %c0_i32 = arith.constant 0 : i32
    %c0_i32_0 = arith.constant 0 : i32
    %c0_i32_1 = arith.constant 0 : i32
    return %c0_i32, %c0_i32_0 : i32, i32
  }
}

</mosaic_0001>

<bundles_post_ra>
// kernel: tpu_custom_call.1
= control target key start
LH: loop header
LB: loop body
LE: loop exit
PB: predicated region body
PF: predicated region fallthrough
CT: control target
= control target key end

     0   :  { %8 = vsyncpa [#allocation4], 0  ;;  %s209_s0 = inlined_call_operand.vmem [shape: f32[8,32], index: 0, kind: input, shape index: {}]   ;;  %s210_s1 = inlined_call_operand.hbm [shape: f32[8,32], index: 1, kind: input, shape index: {}]   ;;  %s211_s2 = inlined_call_operand.vmem [shape: f32[8,1], index: 2, kind: input, shape index: {}]   ;;  %s212_s3 = inlined_call_operand.hbm [shape: f32[1,1], index: 3, kind: output, shape index: {}]  }
   0x1   :  { %9 = vsyncpa [#allocation5], 0  ;;  %s17_s14 = sshll.u32 %s210_s1, 4  ;;  %s171_s15 = smov [#allocation3]   ;;  %s18_s14 = int_to_ptr.hbm [resolvable:$true] %s17_s14 }
   0x2   :  { %s19_s16 = sshll.u32 %s171_s15, 4  ;;  %s20_s16 = int_to_ptr.vmem [resolvable:$true] %s19_s16 }
   0x3   :  { %22 = dma.hbm_to_vmem [thread:$0]  %s18_s14, 128, %s20_s16, [#allocation4]  }
   0x4   :  { %167 = dma.done.wait [#allocation4], 128  }
   0x5   :  { %168 = vsyncadd [#allocation4], 4294967168  ;;  %v35_v0 = vld [vmem:[%s209_s0] sm:$0xff]  ;;  %vm40_vm0 = vcmask 261120   ;;  %vm73_vm3 = vcmask 7168   ;;  %vm33_vm4 = vcmask 0  }
   0x6   :  { %v36_v1 = vld [vmem:[#allocation3] sm:$0xff]  ;;  %v172_v27 = vmov 0.0   ;;  %s101_s23 = sshll.u32 %s212_s3, 4  ;;  %s102_s23 = int_to_ptr.hbm [resolvable:$true] %s101_s23 }
   0x7   :  { %v38_v2 = vsub.f32 %v35_v0, %v36_v1  ;;  %v37_v14 = vld [vmem:[%s211_s2] sm:$0xff]  ;;  %34 = vst.msk [vmem:[#allocation2] sm:$0x1] %vm33_vm4, %v172_v27  ;;  %s173_s2 = smov [#allocation6]  }
   0x8   :  { %v60_v19 = vsub.f32 1.0, %v37_v14  ;;  %s99_s20 = sshll.u32 %s173_s2, 4  ;;  %s100_s20 = int_to_ptr.vmem [resolvable:$true] %s99_s20 }
   0x9   :  { %v39_v3 = vmul.f32 %v38_v2, %v38_v2 }
   0xb   :  { %v41_v4 = vsel %vm40_vm0, %v39_v3, 0.0 }
   0xc   :  { %42 = vadd.xlane.f32.xlu0 %v41_v4 }
   0xe   :  { %v72_v35 = vld [vmem:[#allocation2] sm:$0x1] }
  0x7f   :  { %v43_v5 = vpop.xlane.xlu0 %42 }
  0x80   :  { %v44_v6 = vadd.f32 1e-12, %v43_v5 }
  0x82   :  { %117 = vrsqrt.f32 %v44_v6  ;;  %vm52_vm1 = vcmp.eq.f32.partialorder %v44_v6, inf  ;;  %v55_v15 = vand.u32 2147483648, %v44_v6  ;;  %vm54_vm2 = vcmp.eq.f32.partialorder %v44_v6, 0.0 }
  0x88   :  { %v118_v7 = vpop.eup %117 }
  0x89   :  { %v46_v8 = vmul.f32 %v118_v7, %v44_v6 }
  0x8b   :  { %v47_v9 = vmul.f32 %v118_v7, %v46_v8 }
  0x8d   :  { %v48_v10 = vmul.f32 0.5, %v47_v9 }
  0x8f   :  { %v49_v11 = vsub.f32 1.5, %v48_v10 }
  0x91   :  { %v50_v12 = vmul.f32 %v118_v7, %v49_v11 }
  0x93   :  { %v51_v13 = vmul.f32 %v50_v12, %v44_v6 }
  0x95   :  { %v53_v16 = vsel %vm52_vm1, %v44_v6, %v51_v13 }
  0x96   :  { %v56_v17 = vsel %vm54_vm2, %v55_v15, %v53_v16 }
  0x97   :  { %v111_v18 = vadd.f32 -0.5, %v56_v17  ;;  %v61_v20 = vsub.f32 2.0, %v56_v17 }
  0x99   :  { %v58_v21 = vmax.f32 %v111_v18, 0.0  ;;  %v62_v22 = vmax.f32 %v61_v20, 0.0 }
  0x9b   :  { %v59_v23 = vmul.f32 %v58_v21, %v37_v14  ;;  %v63_v24 = vmul.f32 %v62_v22, %v60_v19 }
  0x9d   :  { %v70_v25 = vadd.f32 %v63_v24, %v59_v23 }
  0x9f   :  { %v74_v26 = vsel %vm73_vm3, %v70_v25, 0.0 }
  0xa0   :  { %75 = vadd.xlane.f32.xlu0 %v74_v26 }
 0x113   :  { %v76_v28 = vpop.xlane.xlu0 %75 }
 0x114   :  { %v77_v29 = vrot.slane %v76_v28, 4 }
 0x116   :  { %v78_v30 = vadd.f32 %v77_v29, %v76_v28 }
 0x118   :  { %v79_v31 = vrot.slane %v78_v30, 2 }
 0x11a   :  { %v80_v32 = vadd.f32 %v79_v31, %v78_v30 }
 0x11c   :  { %v81_v33 = vrot.slane %v80_v32, 1 }
 0x11e   :  { %v82_v34 = vadd.f32 %v81_v33, %v80_v32 }
 0x120   :  { %112 = vpush %v82_v34 }
 0x151   :  { %s113_s0 = spop %112 }
 0x152   :  { %v84_v36 = vstv %s113_s0 }
 0x153   :  { %v85_v37 = vadd.f32 %v84_v36, %v72_v35 }
 0x155   :  { %87 = vst.msk [vmem:[#allocation2] sm:$0x1] %vm33_vm4, %v85_v37 }
 0x15c   :  { %v91_v38 = vld [vmem:[#allocation2] sm:$0x1] }
 0x15d   :  { %v92_v39 = vmul.f32 0.125, %v91_v38 }
 0x15f   :  { %93 = vst.msk [vmem:[#allocation6] sm:$0x1] %vm33_vm4, %v92_v39 }
 0x160   :  { %104 = dma.vmem_to_hbm [thread:$0]  %s100_s20, 16, %s102_s23, [#allocation5]  }
 0x161   :  { %169 = dma.done.wait [#allocation5], 16  }
 0x162   :  { %170 = vsyncadd [#allocation5], 4294967280 }
 0x163   :  { %109 = vsyncpa [#allocation4], 1 }
 0x164   :  { %110 = vsyncpa [#allocation5], 1 }

</bundles_post_ra>
